<compile_context>
chip_gen: v7x
topology: tpu7x:2x2x1
jax: 0.10.0
libtpu: 0.0.40
codegen_flags: <defaults>
</compile_context>

<pallas_src>
import jax
import jax.numpy as jnp
from jax.experimental import pallas as pl
from jax.experimental.pallas import tpu as pltpu


def _round_up(n, m):
    return ((n + m - 1) // m) * m


def value_net_kernel(x_ref, w1_ref, b1_ref, w2_ref, b2_ref, wv_ref, bv_ref, v_ref):
    # fc1 + ReLU : (TM, D)bf16 @ (D, H1)bf16 -> f32 accum; bias/ReLU stay f32
    # on the VPU (v5e has no bf16 VPU datapath).  The f32->bf16 cast of the
    # input tile happens here (cheap VPU op) instead of as a wrapper convert.
    x = x_ref[...].astype(jnp.bfloat16)
    h1 = jnp.dot(x, w1_ref[...], preferred_element_type=jnp.float32)
    h1 = jnp.maximum(h1 + b1_ref[...], 0.0)

    # fc2 + ReLU : activation goes back to bf16 only as the MXU input.
    h2 = jnp.dot(h1.astype(jnp.bfloat16), w2_ref[...],
                 preferred_element_type=jnp.float32)
    h2 = jnp.maximum(h2 + b2_ref[...], 0.0)

    # v head (N=1): VPU multiply + reduction (keeps the MXU free and avoids a
    # lane-padded (256, 1) weight tile).  Fold halves with a VPU add first so
    # only half the reduction hits the XLU (split lands on a 128-lane edge).
    p = h2 * wv_ref[...]                              # (TM, H2) f32, VPU
    h = p.shape[-1]
    if h % 256 == 0:
        p = p[:, : h // 2] + p[:, h // 2:]            # (TM, H2/2), VPU
    v = jnp.sum(p, axis=-1) + bv_ref[0]               # (TM,), XLU reduce + SMEM bias

    # Lane-dense store: one (1, TM) row per grid step -> dense HBM writeback,
    # no per-row masked lane stores.
    v_ref[...] = v.reshape(1, -1)


def prepare_params(params):
    """One-time cast of f32 params into the kernel's dtypes.

    Call once (e.g. after each optimizer step), NOT per forward call, so the
    forward pass emits no per-call convert ops.
    """
    return {
        "w1": params["w1"].astype(jnp.bfloat16),
        "b1": params["b1"].reshape(1, -1).astype(jnp.float32),
        "w2": params["w2"].astype(jnp.bfloat16),
        "b2": params["b2"].reshape(1, -1).astype(jnp.float32),
        "wv": params["wv"].reshape(1, -1).astype(jnp.float32),
        "bv": params["bv"].reshape(1).astype(jnp.float32),
    }


def value_network_forward(state, kparams, *, block_rows=1024):
    """Full ValueNetwork forward pass in a single fused Pallas kernel.

    state   : (B, input_dims) float32
    kparams : output of prepare_params()
    returns : (B, 1) float32
    """
    B, D = state.shape
    H1 = kparams["w1"].shape[1]
    H2 = kparams["w2"].shape[1]

    # Batch tile: multiple of 8, capped at block_rows, and chosen so the grid
    # has >= 2 steps whenever B > 8 (v7x megacore sharding needs >=2 parallel
    # grid steps; harmless on single-TC v5e/v6e).
    tm = max(8, min(block_rows, _round_up(pl.cdiv(B, 2), 8)))
    num_blocks = pl.cdiv(B, tm)

    def const(shape):
        # Constant block index -> weights stay resident across grid steps.
        return pl.BlockSpec(shape, lambda i: (0,) * len(shape))

    out = pl.pallas_call(
        value_net_kernel,
        out_shape=jax.ShapeDtypeStruct((num_blocks, tm), jnp.float32),
        grid=(num_blocks,),
        in_specs=[
            pl.BlockSpec((tm, D), lambda i: (i, 0)),              # state tile (f32)
            const((D, H1)),                                       # w1 (bf16)
            const((1, H1)),                                       # b1 (f32)
            const((H1, H2)),                                      # w2 (bf16)
            const((1, H2)),                                       # b2 (f32)
            const((1, H2)),                                       # wv row (f32)
            pl.BlockSpec(memory_space=pltpu.MemorySpace.SMEM),    # bv scalar
        ],
        out_specs=pl.BlockSpec((1, tm), lambda i: (i, 0)),        # lane-dense rows
        compiler_params=pltpu.CompilerParams(
            dimension_semantics=("parallel",)),
    )(
        state.astype(jnp.float32),
        kparams["w1"], kparams["b1"],
        kparams["w2"], kparams["b2"],
        kparams["wv"], kparams["bv"],
    )
    # Flatten (num_blocks, tm) back to per-row values; drop ragged-tail rows.
    return out.reshape(-1)[:B].reshape(B, 1)


def init_params(key, input_dims, fc1_dims=256, fc2_dims=256):
    """Deterministic PyTorch-style uniform(-1/sqrt(fan_in), 1/sqrt(fan_in)) init."""
    ks = jax.random.split(key, 6)

    def unif(k, shape, fan_in):
        bound = 1.0 / jnp.sqrt(jnp.float32(fan_in))
        return jax.random.uniform(k, shape, jnp.float32, -bound, bound)

    return {
        "w1": unif(ks[0], (input_dims, fc1_dims), input_dims),
        "b1": unif(ks[1], (1, fc1_dims), input_dims),
        "w2": unif(ks[2], (fc1_dims, fc2_dims), fc1_dims),
        "b2": unif(ks[3], (1, fc2_dims), fc1_dims),
        "wv": unif(ks[4], (1, fc2_dims), fc2_dims),   # torch v.weight layout (1, 256)
        "bv": unif(ks[5], (1,), fc2_dims),
    }


if __name__ == "__main__":
    key = jax.random.PRNGKey(0)
    k_params, k_state = jax.random.split(key)

    B = 8            # small batch
    INPUT_DIMS = 16  # observation dim
    FC1, FC2 = 256, 256

    params = init_params(k_params, INPUT_DIMS, FC1, FC2)
    kparams = prepare_params(params)          # cast once, reused across calls
    state = jax.random.normal(k_state, (B, INPUT_DIMS), dtype=jnp.float32)

    v = value_network_forward(state, kparams)
    jax.block_until_ready(v)
    assert v.shape == (B, 1)

    # Reference with the same bf16-MXU / f32-accumulate recipe.
    xb = state.astype(jnp.bfloat16)
    h1 = jnp.maximum(
        jnp.dot(xb, kparams["w1"], preferred_element_type=jnp.float32)
        + params["b1"], 0.0)
    h2 = jnp.maximum(
        jnp.dot(h1.astype(jnp.bfloat16), kparams["w2"],
                preferred_element_type=jnp.float32) + params["b2"], 0.0)
    v_ref = jnp.sum(h2 * params["wv"], axis=-1, keepdims=True) + params["bv"]
    assert jnp.allclose(v, v_ref, atol=2e-3, rtol=2e-3), \
        float(jnp.max(jnp.abs(v - v_ref)))

    # Loose sanity check against pure-f32 math (bf16 rounding tolerance).
    h1f = jnp.maximum(state @ params["w1"] + params["b1"], 0.0)
    h2f = jnp.maximum(h1f @ params["w2"] + params["b2"], 0.0)
    v_f32 = jnp.sum(h2f * params["wv"], axis=-1, keepdims=True) + params["bv"]
    assert jnp.allclose(v, v_f32, atol=3e-2, rtol=3e-2)

    print("KERNEL_OK")
</pallas_src>

<mosaic_0001>
module attributes {stable_mosaic.version = 11 : i64} {
  func.func @value_net_kernel(%arg0: i32, %arg1: memref<8x16xf32, #tpu.memory_space<vmem>>, %arg2: memref<16x256xbf16, #tpu.memory_space<vmem>>, %arg3: memref<1x256xf32, #tpu.memory_space<vmem>>, %arg4: memref<256x256xbf16, #tpu.memory_space<vmem>>, %arg5: memref<1x256xf32, #tpu.memory_space<vmem>>, %arg6: memref<1x256xf32, #tpu.memory_space<vmem>>, %arg7: memref<1xf32, #tpu.memory_space<smem>>, %arg8: memref<1x8xf32, #tpu.memory_space<vmem>>) attributes {dimension_semantics = [#tpu.dimension_semantics<parallel>], iteration_bounds = array<i64: 1>, scalar_prefetch = 0 : i64, scratch_operands = 0 : i64, tpu.core_type = #tpu.core_type<tc>, window_params = [{transform_indices = @transform_0, window_bounds = array<i64: 8, 16>}, {pipeline_mode = #tpu.pipeline_mode<synchronous>, transform_indices = @transform_1, window_bounds = array<i64: 16, 256>}, {pipeline_mode = #tpu.pipeline_mode<synchronous>, transform_indices = @transform_2, window_bounds = array<i64: 1, 256>}, {pipeline_mode = #tpu.pipeline_mode<synchronous>, transform_indices = @transform_3, window_bounds = array<i64: 256, 256>}, {pipeline_mode = #tpu.pipeline_mode<synchronous>, transform_indices = @transform_4, window_bounds = array<i64: 1, 256>}, {pipeline_mode = #tpu.pipeline_mode<synchronous>, transform_indices = @transform_5, window_bounds = array<i64: 1, 256>}, {transform_indices = @transform_6, window_bounds = array<i64: 1>}, {transform_indices = @transform_7, window_bounds = array<i64: 1, 8>}]} {
    %c0 = arith.constant 0 : index
    %c0_0 = arith.constant 0 : index
    %0 = vector.load %arg1[%c0, %c0_0] : memref<8x16xf32, #tpu.memory_space<vmem>>, vector<8x16xf32>
    %1 = arith.truncf %0 : vector<8x16xf32> to vector<8x16xbf16>
    %c0_1 = arith.constant 0 : index
    %c0_2 = arith.constant 0 : index
    %2 = vector.load %arg2[%c0_1, %c0_2] : memref<16x256xbf16, #tpu.memory_space<vmem>>, vector<16x256xbf16>
    %cst = arith.constant dense<0.000000e+00> : vector<8x256xf32>
    %3 = tpu.matmul %1, %2, %cst {dimension_numbers = #tpu.dot_dimension_numbers<[1], [0], [0], [1], [0, 0, 1, 1], [], []>} : vector<8x16xbf16>, vector<16x256xbf16>, vector<8x256xf32> -> vector<8x256xf32>
    %c0_3 = arith.constant 0 : index
    %c0_4 = arith.constant 0 : index
    %4 = vector.load %arg3[%c0_3, %c0_4] : memref<1x256xf32, #tpu.memory_space<vmem>>, vector<1x256xf32>
    %5 = vector.broadcast %4 : vector<1x256xf32> to vector<8x256xf32>
    %6 = arith.addf %3, %5 : vector<8x256xf32>
    %cst_5 = arith.constant 0.000000e+00 : f32
    %7 = vector.broadcast %cst_5 : f32 to vector<8x256xf32>
    %8 = arith.maximumf %6, %7 : vector<8x256xf32>
    %9 = arith.truncf %8 : vector<8x256xf32> to vector<8x256xbf16>
    %c0_6 = arith.constant 0 : index
    %c0_7 = arith.constant 0 : index
    %10 = vector.load %arg4[%c0_6, %c0_7] : memref<256x256xbf16, #tpu.memory_space<vmem>>, vector<256x256xbf16>
    %cst_8 = arith.constant dense<0.000000e+00> : vector<8x256xf32>
    %11 = tpu.matmul %9, %10, %cst_8 {dimension_numbers = #tpu.dot_dimension_numbers<[1], [0], [0], [1], [0, 0, 1, 1], [], []>} : vector<8x256xbf16>, vector<256x256xbf16>, vector<8x256xf32> -> vector<8x256xf32>
    %c0_9 = arith.constant 0 : index
    %c0_10 = arith.constant 0 : index
    %12 = vector.load %arg5[%c0_9, %c0_10] : memref<1x256xf32, #tpu.memory_space<vmem>>, vector<1x256xf32>
    %13 = vector.broadcast %12 : vector<1x256xf32> to vector<8x256xf32>
    %14 = arith.addf %11, %13 : vector<8x256xf32>
    %cst_11 = arith.constant 0.000000e+00 : f32
    %15 = vector.broadcast %cst_11 : f32 to vector<8x256xf32>
    %16 = arith.maximumf %14, %15 : vector<8x256xf32>
    %c0_12 = arith.constant 0 : index
    %c0_13 = arith.constant 0 : index
    %17 = vector.load %arg6[%c0_12, %c0_13] : memref<1x256xf32, #tpu.memory_space<vmem>>, vector<1x256xf32>
    %18 = vector.broadcast %17 : vector<1x256xf32> to vector<8x256xf32>
    %19 = arith.mulf %16, %18 : vector<8x256xf32>
    %20 = vector.extract_strided_slice %19 {offsets = [0, 0], sizes = [8, 128], strides = [1, 1]} : vector<8x256xf32> to vector<8x128xf32>
    %21 = vector.extract_strided_slice %19 {offsets = [0, 128], sizes = [8, 128], strides = [1, 1]} : vector<8x256xf32> to vector<8x128xf32>
    %22 = arith.addf %20, %21 : vector<8x128xf32>
    %cst_14 = arith.constant dense<0.000000e+00> : vector<8xf32>
    %23 = vector.multi_reduction <add>, %22, %cst_14 [1] : vector<8x128xf32> to vector<8xf32>
    %c0_15 = arith.constant 0 : index
    %24 = memref.load %arg7[%c0_15] : memref<1xf32, #tpu.memory_space<smem>>
    %25 = vector.broadcast %24 : f32 to vector<8xf32>
    %26 = arith.addf %23, %25 : vector<8xf32>
    %27 = vector.shape_cast %26 : vector<8xf32> to vector<1x8xf32>
    %c0_16 = arith.constant 0 : index
    %c0_17 = arith.constant 0 : index
    %28 = vector.load %arg8[%c0_16, %c0_17] : memref<1x8xf32, #tpu.memory_space<vmem>>, vector<1x8xf32>
    tpu.vector_store %arg8[%c0_16, %c0_17], %27 {strides = array<i32>} : memref<1x8xf32, #tpu.memory_space<vmem>>, vector<1x8xf32>,
    return
  }
  func.func @transform_0(%arg0: i32) -> (i32, i32) {
    %c0_i32 = arith.constant 0 : i32
    %c0_i32_0 = arith.constant 0 : i32
    return %arg0, %c0_i32 : i32, i32
  }
  func.func @transform_1(%arg0: i32) -> (i32, i32) {
    %c0_i32 = arith.constant 0 : i32
    %c0_i32_0 = arith.constant 0 : i32
    %c0_i32_1 = arith.constant 0 : i32
    return %c0_i32, %c0_i32_0 : i32, i32
  }
  func.func @transform_2(%arg0: i32) -> (i32, i32) {
    %c0_i32 = arith.constant 0 : i32
    %c0_i32_0 = arith.constant 0 : i32
    %c0_i32_1 = arith.constant 0 : i32
    return %c0_i32, %c0_i32_0 : i32, i32
  }
  func.func @transform_3(%arg0: i32) -> (i32, i32) {
    %c0_i32 = arith.constant 0 : i32
    %c0_i32_0 = arith.constant 0 : i32
    %c0_i32_1 = arith.constant 0 : i32
    return %c0_i32, %c0_i32_0 : i32, i32
  }
  func.func @transform_4(%arg0: i32) -> (i32, i32) {
    %c0_i32 = arith.constant 0 : i32
    %c0_i32_0 = arith.constant 0 : i32
    %c0_i32_1 = arith.constant 0 : i32
    return %c0_i32, %c0_i32_0 : i32, i32
  }
  func.func @transform_5(%arg0: i32) -> (i32, i32) {
    %c0_i32 = arith.constant 0 : i32
    %c0_i32_0 = arith.constant 0 : i32
    %c0_i32_1 = arith.constant 0 : i32
    return %c0_i32, %c0_i32_0 : i32, i32
  }
  func.func @transform_6(%arg0: i32) -> i32 {
    %c0_i32 = arith.constant 0 : i32
    %c0_i32_0 = arith.constant 0 : i32
    return %c0_i32 : i32
  }
  func.func @transform_7(%arg0: i32) -> (i32, i32) {
    %c0_i32 = arith.constant 0 : i32
    %c0_i32_0 = arith.constant 0 : i32
    return %arg0, %c0_i32 : i32, i32
  }
}

</mosaic_0001>

<bundles_post_ra>
// kernel: tpu_custom_call.1
= control target key start
LH: loop header
LB: loop body
LE: loop exit
PB: predicated region body
PF: predicated region fallthrough
CT: control target
= control target key end

     0   :  { %13 = vsyncpa [#allocation4], 0  ;;  %s736_s0 = inlined_call_operand.hbm [shape: f32[8,16], index: 0, kind: input, shape index: {}]   ;;  %s737_s1 = inlined_call_operand.hbm [shape: bf16[16,256], index: 1, kind: input, shape index: {}]   ;;  %s738_s2 = inlined_call_operand.vmem [shape: f32[1,256], index: 2, kind: input, shape index: {}]   ;;  %s739_s3 = inlined_call_operand.hbm [shape: bf16[256,256], index: 3, kind: input, shape index: {}]   ;;  %s740_s4 = inlined_call_operand.vmem [shape: f32[1,256], index: 4, kind: input, shape index: {}]   ;;  %s741_s5 = inlined_call_operand.vmem [shape: f32[1,256], index: 5, kind: input, shape index: {}]   ;;  %s742_s6 = inlined_call_operand.<no memory space> [shape: f32[1], index: 6, kind: input, shape index: {}]   ;;  %s743_s7 = inlined_call_operand.hbm [shape: f32[1,8], index: 7, kind: output, shape index: {}]  }
   0x1   :  { %14 = vsyncpa [#allocation7], 0 }
   0x2   :  { %15 = vsyncpa [#allocation5], 0  ;;  %s623_s24 = smov [#allocation6]   ;;  %s529_s28 = scalar_lea.hbm %s737_s1, 256 }
   0x3   :  { %s31_s25 = sshll.u32 %s623_s24, 4  ;;  %p530_p0 = scmp.ne.s32.totalorder %s737_s1, %s529_s28  ;;  %s32_s25 = int_to_ptr.vmem [resolvable:$true] %s31_s25 }
   0x4   :  { %p533_p1 = scmp.lt.u32.totalorder %s529_s28, %s737_s1 }
   0x6   :  { %p535_p2 = pnand %p533_p1, %p530_p0 }
   0x8   :  { %538 = shalt.err (!%p535_p2)
}
   0x9   :  { %s539_s10 = scalar_lea.vmem %s32_s25, 256  ;;  %p544_p4 = scmp.lt.s32.totalorder %s32_s25, %s32_s25 }
   0xa   :  { %p540_p3 = scmp.ne.s32.totalorder %s32_s25, %s539_s10  ;;  %p545_p5 = scmp.lt.s32.totalorder %s539_s10, %s539_s10 }
   0xc   :  { %p546_p6 = por %p545_p5, %p544_p4 }
   0xe   :  { %p547_p7 = pnand %p546_p6, %p540_p3 }
  0x10   :  { %550 = shalt.err (!%p547_p7)
}
  0x11   :  { %s624_s11 = smov 128   ;;  %s625_s12 = smov 8  }
  0x12   :  { %37 = dma.hbm_to_vmem [thread:$0]  %s737_s1, 256, %s32_s25, [#allocation7], %s624_s11, %s624_s11, %s625_s12  }
  0x13   :  { %s626_s15 = smov [#allocation3]   ;;  %s627_s17 = smov [#allocation8]  }
  0x14   :  { %s22_s16 = sshll.u32 %s626_s15, 4  ;;  %s45_s18 = sshll.u32 %s627_s17, 4  ;;  %s23_s16 = int_to_ptr.vmem [resolvable:$true] %s22_s16  ;;  %s46_s18 = int_to_ptr.vmem [resolvable:$true] %s45_s18 }
  0x15   :  { %s551_s21 = scalar_lea.hbm %s736_s0, 128 }
  0x16   :  { %p552_p8 = scmp.ne.s32.totalorder %s736_s0, %s551_s21  ;;  %p555_p9 = scmp.lt.u32.totalorder %s551_s21, %s736_s0 }
  0x18   :  { %p557_p10 = pnand %p555_p9, %p552_p8 }
  0x1a   :  { %560 = shalt.err (!%p557_p10)
}
  0x1b   :  { %s561_s1 = scalar_lea.vmem %s23_s16, 128  ;;  %p566_p12 = scmp.lt.s32.totalorder %s23_s16, %s23_s16 }
  0x1c   :  { %p562_p11 = scmp.ne.s32.totalorder %s23_s16, %s561_s1  ;;  %p567_p13 = scmp.lt.s32.totalorder %s561_s1, %s561_s1 }
  0x1e   :  { %p568_p0 = por %p567_p13, %p566_p12 }
  0x20   :  { %p569_p1 = pnand %p568_p0, %p562_p11 }
  0x22   :  { %572 = shalt.err (!%p569_p1)
}
  0x23   :  { %25 = dma.hbm_to_vmem [thread:$0]  %s736_s0, 128, %s23_s16, [#allocation4]  }
  0x24   :  { %s573_s30 = scalar_lea.hbm %s739_s3, 4096 }
  0x25   :  { %p574_p2 = scmp.ne.s32.totalorder %s739_s3, %s573_s30  ;;  %p577_p3 = scmp.lt.u32.totalorder %s573_s30, %s739_s3 }
  0x27   :  { %p579_p4 = pnand %p577_p3, %p574_p2 }
  0x29   :  { %582 = shalt.err (!%p579_p4)
}
  0x2a   :  { %s583_s14 = scalar_lea.vmem %s46_s18, 4096  ;;  %p588_p6 = scmp.lt.s32.totalorder %s46_s18, %s46_s18 }
  0x2b   :  { %p584_p5 = scmp.ne.s32.totalorder %s46_s18, %s583_s14  ;;  %p589_p7 = scmp.lt.s32.totalorder %s583_s14, %s583_s14 }
  0x2d   :  { %p590_p8 = por %p589_p7, %p588_p6 }
  0x2f   :  { %p591_p9 = pnand %p590_p8, %p584_p5 }
  0x31   :  { %594 = shalt.err (!%p591_p9)
}
  0x32   :  { %51 = dma.hbm_to_vmem [thread:$0]  %s739_s3, 4096, %s46_s18, [#allocation7], %s624_s11, %s624_s11, %s625_s12  }
  0x33   :  { %617 = dma.done.wait [#allocation4], 128  }
  0x34   :  { %618 = vsyncadd [#allocation4], 4294967168 }
  0x35   :  { %619 = dma.done.wait [#allocation7], 4352  }
  0x36   :  { %620 = vsyncadd [#allocation7], 4294962944  ;;  %v628_v0 = vmov 0   ;;  %v478_v1 = vld [vmem:[#allocation6 + $0x4] ss:$8 sps:$4 sm:$0xff]   ;;  %v68_v3 = vld [vmem:[#allocation3] sm:$0xff]  ;;  %v74_v37 = vlaneseq }
  0x37   :  { %130 = vmatprep.mubr.bf16.mxu0 %v628_v0  ;;  %v480_v2 = vld [vmem:[#allocation6] ss:$8 sps:$4 sm:$0xff]   ;;  %98 = vmatprep.subr.bf16.mxu0 %v478_v1  ;;  %v69_v4 = vpack.c.bf16 %v68_v3, %v68_v3  ;;  %v481_v5 = vld [vmem:[#allocation8 + $0x4] ss:$8 sps:$4 sm:$0xff]   ;;  %v483_v6 = vld [vmem:[#allocation8] ss:$8 sps:$4 sm:$0xff]  }
  0x38   :  { %99 = vmatpush1.bf16.msra.mxu0 %v480_v2  ;;  %vm94_vm0 = vcmask 130048   ;;  %v484_v7 = vld [vmem:[#allocation8 + $0x14] ss:$8 sps:$4 sm:$0xff]   ;;  %347 = vmatprep.subr.bf16.mxu1 %v481_v5  ;;  %v486_v8 = vld [vmem:[#allocation8 + $0x10] ss:$8 sps:$4 sm:$0xff]   ;;  %v75_v38 = vshrl.u32 %v74_v37, 7 }
  0x39   :  { %348 = vmatpush1.bf16.msra.mxu1 %v483_v6  ;;  %v487_v9 = vld [vmem:[#allocation8 + $0x24] ss:$8 sps:$4 sm:$0xff]   ;;  %v489_v10 = vld [vmem:[#allocation8 + $0x20] ss:$8 sps:$4 sm:$0xff]   ;;  %v490_v11 = vld [vmem:[#allocation8 + $0x34] ss:$8 sps:$4 sm:$0xff]  }
  0x3a   :  { %349 = vmatprep.subr.bf16.mxu1 %v484_v7  ;;  %v492_v12 = vld [vmem:[#allocation8 + $0x30] ss:$8 sps:$4 sm:$0xff]   ;;  %v493_v13 = vld [vmem:[#allocation8 + $0x44] ss:$8 sps:$4 sm:$0xff]   ;;  %v495_v14 = vld [vmem:[#allocation8 + $0x40] ss:$8 sps:$4 sm:$0xff]  }
  0x3b   :  { %438 = vmatmul.mubr.msk.bf16.vlgmr.msra.gmra.mrb[0].mxu0 %vm94_vm0, %v69_v4  ;;  %v496_v15 = vld [vmem:[#allocation8 + $0x54] ss:$8 sps:$4 sm:$0xff]   ;;  %v498_v16 = vld [vmem:[#allocation8 + $0x50] ss:$8 sps:$4 sm:$0xff]   ;;  %v499_v17 = vld [vmem:[#allocation8 + $0x64] ss:$8 sps:$4 sm:$0xff]  }
  0x3c   :  { %v501_v18 = vld [vmem:[#allocation8 + $0x60] ss:$8 sps:$4 sm:$0xff]   ;;  %v502_v19 = vld [vmem:[#allocation8 + $0x74] ss:$8 sps:$4 sm:$0xff]   ;;  %v504_v20 = vld [vmem:[#allocation8 + $0x70] ss:$8 sps:$4 sm:$0xff]  }
  0x3d   :  { %350 = vmatpush1.bf16.msra.mxu1 %v486_v8  ;;  %v505_v21 = vld [vmem:[#allocation8 + $0x84] ss:$8 sps:$4 sm:$0xff]   ;;  %v507_v22 = vld [vmem:[#allocation8 + $0x80] ss:$8 sps:$4 sm:$0xff]   ;;  %v508_v23 = vld [vmem:[#allocation8 + $0x94] ss:$8 sps:$4 sm:$0xff]   ;;  %v408_v8 = vstv %s742_s6 }
  0x3e   :  { %351 = vmatprep.subr.bf16.mxu1 %v487_v9  ;;  %v510_v24 = vld [vmem:[#allocation8 + $0x90] ss:$8 sps:$4 sm:$0xff]   ;;  %v511_v25 = vld [vmem:[#allocation8 + $0xa4] ss:$8 sps:$4 sm:$0xff]   ;;  %v513_v26 = vld [vmem:[#allocation8 + $0xa0] ss:$8 sps:$4 sm:$0xff]  }
  0x3f   :  { %v514_v27 = vld [vmem:[#allocation8 + $0xb4] ss:$8 sps:$4 sm:$0xff]   ;;  %v516_v28 = vld [vmem:[#allocation8 + $0xb0] ss:$8 sps:$4 sm:$0xff]   ;;  %v517_v29 = vld [vmem:[#allocation8 + $0xc4] ss:$8 sps:$4 sm:$0xff]  }
  0x40   :  { %v519_v30 = vld [vmem:[#allocation8 + $0xc0] ss:$8 sps:$4 sm:$0xff]   ;;  %v520_v31 = vld [vmem:[#allocation8 + $0xd4] ss:$8 sps:$4 sm:$0xff]   ;;  %v522_v32 = vld [vmem:[#allocation8 + $0xd0] ss:$8 sps:$4 sm:$0xff]  }
  0x41   :  { %352 = vmatpush1.bf16.msra.mxu1 %v489_v10  ;;  %v523_v33 = vld [vmem:[#allocation8 + $0xe4] ss:$8 sps:$4 sm:$0xff]   ;;  %v525_v34 = vld [vmem:[#allocation8 + $0xe0] ss:$8 sps:$4 sm:$0xff]   ;;  %v526_v35 = vld [vmem:[#allocation8 + $0xf4] ss:$8 sps:$4 sm:$0xff]  }
  0x42   :  { %353 = vmatprep.subr.bf16.mxu1 %v490_v11  ;;  %v528_v36 = vld [vmem:[#allocation8 + $0xf0] ss:$8 sps:$4 sm:$0xff]   ;;  %v76_v39 = vsub.s32 0, %v75_v38  ;;  %v72_v40 = vld [vmem:[%s738_s2] sm:$0x3]  ;;  %v80_v41 = vsub.s32 1, %v75_v38 }
  0x43   :  { %v175_v54 = vld [vmem:[%s740_s4] sm:$0x3]  ;;  %v412_v7 = vand.u32 127, %v74_v37  ;;  %vm418_vm1 = vcmask 57344  }
  0x44   :  { %v77_v42 = vrot.slane %v72_v40, %v76_v39  ;;  %v81_v43 = vrot.slane %v72_v40, %v80_v41  ;;  %v180_v55 = vrot.slane %v175_v54, %v76_v39  ;;  %v184_v56 = vrot.slane %v175_v54, %v80_v41  ;;  %v390_v57 = vld [vmem:[%s741_s5] sm:$0x3]  ;;  %s629_s5 = smov [#allocation9]  }
  0x45   :  { %354 = vmatpush1.bf16.msra.mxu1 %v492_v12  ;;  %v395_v61 = vrot.slane %v390_v57, %v76_v39  ;;  %v399_v0 = vrot.slane %v390_v57, %v80_v41  ;;  %v415_v9 = vsub.s32 %v412_v7, %v75_v38  ;;  %s426_s19 = sshll.u32 %s629_s5, 4  ;;  %s427_s19 = int_to_ptr.vmem [resolvable:$true] %s426_s19 }
  0x46   :  { %355 = vmatprep.subr.bf16.mxu1 %v493_v13  ;;  %s595_s20 = scalar_lea.vmem %s427_s19, 16  ;;  %s599_s21 = scalar_lea.vmem %s427_s19, 32 }
  0x47   :  { %p596_p10 = scmp.ne.s32.totalorder %s427_s19, %s595_s20  ;;  %p600_p11 = scmp.lt.s32.totalorder %s427_s19, %s427_s19 }
  0x48   :  { %p601_p12 = scmp.lt.s32.totalorder %s599_s21, %s595_s20 }
  0x49   :  { %356 = vmatpush1.bf16.msra.mxu1 %v495_v14 }
  0x4a   :  { %357 = vmatprep.subr.bf16.mxu1 %v496_v15  ;;  %p602_p13 = por %p601_p12, %p600_p11 }
  0x4c   :  { %p603_p0 = pnand %p602_p13, %p596_p10 }
  0x4d   :  { %358 = vmatpush1.bf16.msra.mxu1 %v498_v16 }
  0x4e   :  { %359 = vmatprep.subr.bf16.mxu1 %v499_v17 }
  0x51   :  { %360 = vmatpush1.bf16.msra.mxu1 %v501_v18 }
  0x52   :  { %361 = vmatprep.subr.bf16.mxu1 %v502_v19 }
  0x55   :  { %362 = vmatpush1.bf16.msra.mxu1 %v504_v20 }
  0x56   :  { %363 = vmatprep.subr.bf16.mxu1 %v505_v21 }
  0x59   :  { %364 = vmatpush1.bf16.msra.mxu1 %v507_v22 }
  0x5a   :  { %365 = vmatprep.subr.bf16.mxu1 %v508_v23 }
  0x5d   :  { %366 = vmatpush1.bf16.msra.mxu1 %v510_v24 }
  0x5e   :  { %367 = vmatprep.subr.bf16.mxu1 %v511_v25 }
  0x61   :  { %368 = vmatpush1.bf16.msra.mxu1 %v513_v26 }
  0x62   :  { %369 = vmatprep.subr.bf16.mxu1 %v514_v27 }
  0x65   :  { %370 = vmatpush1.bf16.msra.mxu1 %v516_v28 }
  0x66   :  { %371 = vmatprep.subr.bf16.mxu1 %v517_v29 }
  0x69   :  { %372 = vmatpush1.bf16.msra.mxu1 %v519_v30 }
  0x6a   :  { %373 = vmatprep.subr.bf16.mxu1 %v520_v31 }
  0x6d   :  { %374 = vmatpush1.bf16.msra.mxu1 %v522_v32 }
  0x6e   :  { %375 = vmatprep.subr.bf16.mxu1 %v523_v33 }
  0x71   :  { %376 = vmatpush1.bf16.msra.mxu1 %v525_v34 }
  0x72   :  { %377 = vmatprep.subr.bf16.mxu1 %v526_v35 }
  0x75   :  { %378 = vmatpush1.bf16.msra.mxu1 %v528_v36 }
 0x10e   :  { %v132_v44 = vpop.f32.mrb[0].mxu0 }
 0x10f   :  { %v133_v45 = vadd.f32 %v132_v44, %v77_v42  ;;  %v134_v46 = vpop.f32.mrb[1].mxu0 }
 0x110   :  { %v135_v47 = vadd.f32 %v134_v46, %v81_v43  ;;  %v136_v48 = vpop.f32.mrb[2].mxu0 }
 0x111   :  { %v139_v49 = vmax.f32 %v133_v45, 0.0  ;;  %v137_v50 = vpop.f32.mrb[3].mxu0 }
 0x112   :  { %v140_v51 = vmax.f32 %v135_v47, 0.0 }
 0x113   :  { %v141_v53 = vpack.c.bf16 %v139_v49, %v139_v49 }
 0x114   :  { %v142_v52 = vpack.c.bf16 %v140_v51, %v140_v51 }
 0x116   :  { %379 = vmatprep.mubr.bf16.mxu1 %v142_v52 }
 0x117   :  { %380 = vmatmul.mubr.bf16.vlgmr.msra.gmra.mrb[0].mxu1 %v141_v53 }
 0x1ea   :  { %v381_v58 = vpop.f32.mrb[0].mxu1 }
 0x1eb   :  { %v382_v59 = vadd.f32 %v381_v58, %v180_v55  ;;  %v383_v60 = vpop.f32.mrb[1].mxu1 }
 0x1ec   :  { %v384_v62 = vadd.f32 %v383_v60, %v184_v56  ;;  %v385_v63 = vpop.f32.mrb[2].mxu1 }
 0x1ed   :  { %v388_v1 = vmax.f32 %v382_v59, 0.0  ;;  %v386_v2 = vpop.f32.mrb[3].mxu1 }
 0x1ee   :  { %v389_v3 = vmax.f32 %v384_v62, 0.0 }
 0x1ef   :  { %v402_v4 = vmul.f32 %v395_v61, %v388_v1 }
 0x1f0   :  { %v403_v5 = vmul.f32 %v399_v0, %v389_v3 }
 0x1f2   :  { %v404_v6 = vadd.f32 %v403_v5, %v402_v4 }
 0x1f4   :  { %405 = vadd.xlane.f32.xlu0 %v404_v6 }
 0x281   :  { %v406_v10 = vpop.xlane.xlu0 %405 }
 0x282   :  { %v409_v11 = vadd.f32 %v408_v8, %v406_v10 }
 0x284   :  { %v416_v12 = vrot.slane %v409_v11, %v415_v9 }
 0x286   :  { %419 = vst.msk [vmem:[#allocation9] sm:$0x1] %vm418_vm1, %v416_v12 }
 0x287   :  { %606 = shalt.err (!%p603_p0)
}
 0x288   :  { %s607_s6 = scalar_lea.hbm %s743_s7, 16 }
 0x289   :  { %p608_p1 = scmp.ne.s32.totalorder %s743_s7, %s607_s6  ;;  %p611_p2 = scmp.lt.u32.totalorder %s607_s6, %s743_s7 }
 0x28b   :  { %p613_p3 = pnand %p611_p2, %p608_p1 }
 0x28d   :  { %616 = shalt.err (!%p613_p3)
}
 0x28e   :  { %429 = dma.vmem_to_hbm [thread:$0]  %s427_s19, 16, %s743_s7, [#allocation5]  }
 0x28f   :  { %621 = dma.done.wait [#allocation5], 16  }
 0x290   :  { %622 = vsyncadd [#allocation5], 4294967280 }
 0x291   :  { %433 = vsyncpa [#allocation4], 1 }
 0x292   :  { %434 = vsyncpa [#allocation7], 1 }
 0x293   :  { %435 = vsyncpa [#allocation5], 1 }

</bundles_post_ra>
